<compile_context>
chip_gen: v7x
topology: tpu7x:2x2x1
jax: 0.10.0
libtpu: 0.0.40
codegen_flags: <defaults>
</compile_context>

<pallas_src>
import functools

import jax
import jax.numpy as jnp
from jax.experimental import pallas as pl
from jax.experimental.pallas import tpu as pltpu


# ---------------------------------------------------------------------------
# Kernels
# ---------------------------------------------------------------------------

def _se_single_pass_kernel(x_ref, w1_ref, b1_ref, w2_ref, b2_ref, o_ref, *, inv_l):
    """One batch slab (1, C, L) resident: squeeze, MLP, gate, scale in one pass."""
    # Squeeze: mean over L; accumulate in f32 even for bf16 inputs.
    y = jnp.sum(x_ref[...].astype(jnp.float32), axis=2) * inv_l          # (1, C)
    # Excitation MLP (tiny; latency hides under the slab DMA).
    h = jnp.dot(y, w1_ref[...], preferred_element_type=jnp.float32) + b1_ref[...]
    h = jnp.where(h > 0, h, 0.01 * h)                                    # LeakyReLU(0.01)
    s = jnp.dot(h, w2_ref[...], preferred_element_type=jnp.float32) + b2_ref[...]
    g = pl.reciprocal(1.0 + jnp.exp(-s))                                 # sigmoid, (1, C)
    # Scale: re-read x_ref so no slab-sized value stays live across the MLP
    # (keeps VMEM at the budgeted 4*slab, matters with the larger slab limits).
    o_ref[...] = (x_ref[...] * g[:, :, None]).astype(o_ref.dtype)


def _se_gate_kernel(x_ref, w1_ref, b1_ref, w2_ref, b2_ref, g_ref, acc_ref, *, inv_l):
    """Two-pass, pass 1: accumulate channel sums across L tiles, emit gate at end."""
    lt = pl.program_id(1)

    @pl.when(lt == 0)
    def _():
        acc_ref[...] = jnp.zeros_like(acc_ref)

    # Partial sums in f32 (zero padding of L, if any, contributes nothing).
    acc_ref[...] += jnp.sum(x_ref[...].astype(jnp.float32), axis=2)      # (1, C)

    @pl.when(lt == pl.num_programs(1) - 1)
    def _():
        y = acc_ref[...] * inv_l                                         # mean over true L
        h = jnp.dot(y, w1_ref[...], preferred_element_type=jnp.float32) + b1_ref[...]
        h = jnp.where(h > 0, h, 0.01 * h)                                # LeakyReLU(0.01)
        s = jnp.dot(h, w2_ref[...], preferred_element_type=jnp.float32) + b2_ref[...]
        g = pl.reciprocal(1.0 + jnp.exp(-s))                             # (1, C)
        # Lane-major gate (channels on lanes) -> dense store, cheap pass-2 read.
        g_ref[...] = g.reshape(g_ref.shape).astype(g_ref.dtype)          # (1, 1, C)


def _se_scale_kernel(x_ref, g_ref, o_ref):
    """Two-pass, pass 2: stream x tiles and scale by the per-(batch, channel) gate."""
    C = g_ref.shape[-1]
    g = g_ref[...].reshape(1, C, 1)                                      # per-channel column
    o_ref[...] = (x_ref[...] * g).astype(o_ref.dtype)


# ---------------------------------------------------------------------------
# VMEM / chip budgeting
# ---------------------------------------------------------------------------

_VMEM_MARGIN = 4 * 1024 * 1024     # headroom for compiler-internal scratch / semaphores


def _tpu_chip_info():
    """(vmem_bytes_per_core, tensorcores_per_chip) with conservative fallbacks."""
    vmem, cores, kind = None, 1, ""
    try:
        info = pltpu.get_tpu_info()
        v = getattr(info, "vmem_capacity_bytes", None)
        if v:
            vmem = int(v)
        c = (getattr(info, "num_cores", None)
             or getattr(info, "tensorcores_per_chip", None))
        if c:
            cores = int(c)
    except Exception:
        pass
    try:
        kind = jax.devices()[0].device_kind.lower()
    except Exception:
        pass
    if vmem is None:
        if "v2" in kind or "v3" in kind:
            vmem = 16 * 1024 * 1024
        elif "7" in kind:
            vmem = 64 * 1024 * 1024
        else:
            vmem = 128 * 1024 * 1024          # v4 / v5e / v6e
    if "7" in kind:                            # v7x: 64 MiB per TC, 2 TCs/chip
        vmem = min(vmem, 64 * 1024 * 1024)
        cores = max(cores, 2)
    return vmem, cores


def _vmem_budget():
    vmem, cores = _tpu_chip_info()
    # Never request all physical VMEM; cap at ~100 MiB on 128 MiB parts, ~51 MiB on v7x.
    cap = min(int(0.8 * vmem), 100 * 1024 * 1024)
    return cap, cores


def _compiler_params(semantics, vmem_limit):
    return pltpu.CompilerParams(dimension_semantics=semantics,
                                vmem_limit_bytes=int(vmem_limit))


# ---------------------------------------------------------------------------
# Wrappers
# ---------------------------------------------------------------------------

def _se_single_pass(x, w1, b1, w2, b2, vmem_limit):
    B, C, L = x.shape
    H = w1.shape[1]
    itemsize = x.dtype.itemsize
    param_bytes = (C * H + H + H * C + C) * w1.dtype.itemsize
    cost = pl.CostEstimate(
        flops=2 * B * C * L + 4 * B * C * H,
        transcendentals=B * C,
        bytes_accessed=2 * B * C * L * itemsize + param_bytes,
    )
    return pl.pallas_call(
        functools.partial(_se_single_pass_kernel, inv_l=1.0 / L),
        out_shape=jax.ShapeDtypeStruct((B, C, L), x.dtype),
        grid=(B,),
        in_specs=[
            pl.BlockSpec((1, C, L), lambda b: (b, 0, 0)),
            # Constant index_maps: params DMA'd once, resident across grid steps.
            pl.BlockSpec((C, H), lambda b: (0, 0)),
            pl.BlockSpec((1, H), lambda b: (0, 0)),
            pl.BlockSpec((H, C), lambda b: (0, 0)),
            pl.BlockSpec((1, C), lambda b: (0, 0)),
        ],
        out_specs=pl.BlockSpec((1, C, L), lambda b: (b, 0, 0)),
        compiler_params=_compiler_params(("parallel",), vmem_limit),
        cost_estimate=cost,
    )(x, w1, b1, w2, b2)


def _se_two_pass(x, w1, b1, w2, b2, l_tile, vmem_limit):
    B, C, L = x.shape
    H = w1.shape[1]
    itemsize = x.dtype.itemsize
    L_pad = int(pl.cdiv(L, l_tile)) * l_tile
    if L_pad != L:
        # Zero padding leaves the channel sums untouched; mean uses the true 1/L.
        x = jnp.pad(x, ((0, 0), (0, 0), (0, L_pad - L)))
    n_lt = L_pad // l_tile
    param_bytes = (C * H + H + H * C + C) * w1.dtype.itemsize

    # ---- pass 1: channel sums across L tiles + excitation MLP -> gate ------
    gate = pl.pallas_call(
        functools.partial(_se_gate_kernel, inv_l=1.0 / L),
        out_shape=jax.ShapeDtypeStruct((B, 1, C), jnp.float32),
        grid=(B, n_lt),
        in_specs=[
            pl.BlockSpec((1, C, l_tile), lambda b, l: (b, 0, l)),
            pl.BlockSpec((C, H), lambda b, l: (0, 0)),
            pl.BlockSpec((1, H), lambda b, l: (0, 0)),
            pl.BlockSpec((H, C), lambda b, l: (0, 0)),
            pl.BlockSpec((1, C), lambda b, l: (0, 0)),
        ],
        out_specs=pl.BlockSpec((1, 1, C), lambda b, l: (b, 0, 0)),
        scratch_shapes=[pltpu.VMEM((1, C), jnp.float32)],
        compiler_params=_compiler_params(("parallel", "arbitrary"), vmem_limit),
        cost_estimate=pl.CostEstimate(
            flops=B * C * L_pad + 4 * B * C * H,
            transcendentals=B * C,
            bytes_accessed=B * C * L_pad * itemsize + param_bytes + B * C * 4,
        ),
    )(x, w1, b1, w2, b2)

    # ---- pass 2: stream x again and scale by the gate -----------------------
    out = pl.pallas_call(
        _se_scale_kernel,
        out_shape=jax.ShapeDtypeStruct((B, C, L_pad), x.dtype),
        grid=(B, n_lt),
        in_specs=[
            pl.BlockSpec((1, C, l_tile), lambda b, l: (b, 0, l)),
            pl.BlockSpec((1, 1, C), lambda b, l: (b, 0, 0)),
        ],
        out_specs=pl.BlockSpec((1, C, l_tile), lambda b, l: (b, 0, l)),
        compiler_params=_compiler_params(("parallel", "parallel"), vmem_limit),
        cost_estimate=pl.CostEstimate(
            flops=B * C * L_pad,
            transcendentals=0,
            bytes_accessed=2 * B * C * L_pad * itemsize + B * C * 4,
        ),
    )(x, gate)
    if L_pad != L:
        out = out[:, :, :L]
    return out


def _pick_l_tile(C, L, itemsize, target_bytes):
    """Lane tile for the streaming path.

    Largest multiple of 128 whose (C, tile) slab fits `target_bytes` (~4-8 MiB,
    >= ~85% of HBM roofline). Prefers an exact divisor of L (no padding) unless
    that would shrink the tile below half the target; never degenerates to a
    128-lane tile for awkward L and never falls back to an untiled full-L block.
    """
    max_lanes = max(128, (int(target_bytes) // max(1, C * itemsize)) // 128 * 128)
    l_ceil = int(pl.cdiv(L, 128)) * 128
    if l_ceil <= max_lanes:
        return l_ceil                          # one (possibly padded) tile covers L
    if L % 128 == 0:
        for m in range(max_lanes // 128, max_lanes // 256, -1):
            tile = m * 128
            if L % tile == 0:
                return tile                    # exact divisor, >= half target: no padding
    return max_lanes                           # wrapper pads L up to a multiple of this


def se_block(x, w1, b1, w2, b2, *, l_tile=None):
    """SEBlock forward. x: (B, C, L); w1: (C, H); b1: (1, H); w2: (H, C); b2: (1, C).

    x may be float32 or bfloat16: it streams HBM<->VMEM in its own dtype (bf16
    halves the bytes of this purely bandwidth-bound kernel) while the squeeze
    sum and excitation MLP run in float32 inside the kernels.
    """
    B, C, L = x.shape
    H = w1.shape[1]
    itemsize = x.dtype.itemsize
    cap, cores = _vmem_budget()
    param_bytes = (C * H + H + H * C + C) * max(w1.dtype.itemsize, 4)
    budget = cap - _VMEM_MARGIN - 2 * param_bytes
    assert budget > 0, "SEBlock parameters alone exceed the VMEM budget"
    # TODO(synk): add a C-tiled scale pass for very large channel counts.
    assert 4 * C * 128 * itemsize <= budget, "C too large for the untiled-C kernels"

    if l_tile is None:
        slab = C * L * itemsize
        use_single = 4 * slab <= budget        # double-buffered x + out slabs fit
        if use_single and cores > 1 and B < cores:
            # Megacore (v7x): grid=(B,) with B < #TensorCores idles a core; the
            # two-pass scale pass has a "parallel" L axis that shards across cores.
            if int(pl.cdiv(L, 128)) >= 2 * cores:
                use_single = False
        if use_single:
            return _se_single_pass(x, w1, b1, w2, b2, cap)   # 2x HBM traffic, preferred
        l_tile = _pick_l_tile(C, L, itemsize,
                              target_bytes=min(8 * 1024 * 1024, budget // 4))
    assert l_tile % 128 == 0, "l_tile must be a multiple of 128"
    return _se_two_pass(x, w1, b1, w2, b2, l_tile, cap)


def se_block_ref(x, w1, b1, w2, b2):
    y = jnp.mean(x, axis=2)
    h = y @ w1 + b1
    h = jnp.where(h > 0, h, 0.01 * h)
    s = h @ w2 + b2
    g = jax.nn.sigmoid(s)
    return x * g[:, :, None]


if __name__ == "__main__":
    B, C, L = 4, 64, 256
    reduction = 16
    H = C // reduction  # 4

    key = jax.random.PRNGKey(0)
    kx, k1, k2, k3, k4 = jax.random.split(key, 5)

    x = jax.random.normal(kx, (B, C, L), dtype=jnp.float32)
    # PyTorch Linear weight (out, in) -> stored pre-transposed as (in, out).
    w1 = 0.1 * jax.random.normal(k1, (C, H), dtype=jnp.float32)
    b1 = 0.1 * jax.random.normal(k2, (1, H), dtype=jnp.float32)
    w2 = 0.1 * jax.random.normal(k3, (H, C), dtype=jnp.float32)
    b2 = 0.1 * jax.random.normal(k4, (1, C), dtype=jnp.float32)

    ref = se_block_ref(x, w1, b1, w2, b2)

    # Auto path (slab fits -> single pass, grid over B).
    out_single = jax.block_until_ready(se_block(x, w1, b1, w2, b2))
    # Forced two-pass (L tiled in 128-lane chunks) to exercise the streaming kernels.
    out_tiled = jax.block_until_ready(se_block(x, w1, b1, w2, b2, l_tile=128))
    assert out_single.shape == (B, C, L) and out_tiled.shape == (B, C, L)
    assert jnp.allclose(out_single, ref, atol=1e-5, rtol=1e-5)
    assert jnp.allclose(out_tiled, ref, atol=1e-5, rtol=1e-5)

    # Awkward L (not a multiple of 128): two-pass path pads L with zeros and
    # divides by the true L; output is sliced back.
    L2 = 200
    x2 = jax.random.normal(kx, (B, C, L2), dtype=jnp.float32)
    ref2 = se_block_ref(x2, w1, b1, w2, b2)
    out_pad = jax.block_until_ready(se_block(x2, w1, b1, w2, b2, l_tile=128))
    assert out_pad.shape == (B, C, L2)
    assert jnp.allclose(out_pad, ref2, atol=1e-5, rtol=1e-5)

    # bf16 streaming (halves HBM bytes); squeeze/MLP still accumulate in f32.
    x_bf16 = x.astype(jnp.bfloat16)
    ref_bf16 = se_block_ref(x_bf16.astype(jnp.float32), w1, b1, w2, b2)
    out_bf16 = jax.block_until_ready(se_block(x_bf16, w1, b1, w2, b2))
    assert out_bf16.dtype == jnp.bfloat16
    assert jnp.allclose(out_bf16.astype(jnp.float32), ref_bf16, atol=5e-2, rtol=5e-2)

    print("KERNEL_OK")
</pallas_src>

<mosaic_0001>
module attributes {stable_mosaic.version = 11 : i64} {
  func.func @_se_single_pass_kernel(%arg0: i32, %arg1: memref<1x64x256xf32, #tpu.memory_space<vmem>>, %arg2: memref<64x4xf32, #tpu.memory_space<vmem>>, %arg3: memref<1x4xf32, #tpu.memory_space<vmem>>, %arg4: memref<4x64xf32, #tpu.memory_space<vmem>>, %arg5: memref<1x64xf32, #tpu.memory_space<vmem>>, %arg6: memref<1x64x256xf32, #tpu.memory_space<vmem>>) attributes {dimension_semantics = [#tpu.dimension_semantics<parallel>], iteration_bounds = array<i64: 4>, scalar_prefetch = 0 : i64, scratch_operands = 0 : i64, tpu.core_type = #tpu.core_type<tc>, window_params = [{transform_indices = @transform_0, window_bounds = array<i64: 1, 64, 256>}, {pipeline_mode = #tpu.pipeline_mode<synchronous>, transform_indices = @transform_1, window_bounds = array<i64: 64, 4>}, {pipeline_mode = #tpu.pipeline_mode<synchronous>, transform_indices = @transform_2, window_bounds = array<i64: 1, 4>}, {pipeline_mode = #tpu.pipeline_mode<synchronous>, transform_indices = @transform_3, window_bounds = array<i64: 4, 64>}, {pipeline_mode = #tpu.pipeline_mode<synchronous>, transform_indices = @transform_4, window_bounds = array<i64: 1, 64>}, {transform_indices = @transform_5, window_bounds = array<i64: 1, 64, 256>}]} {
    %c0 = arith.constant 0 : index
    %c0_0 = arith.constant 0 : index
    %c0_1 = arith.constant 0 : index
    %0 = vector.load %arg1[%c0, %c0_0, %c0_1] : memref<1x64x256xf32, #tpu.memory_space<vmem>>, vector<1x64x256xf32>
    %cst = arith.constant dense<0.000000e+00> : vector<1x64xf32>
    %1 = vector.multi_reduction <add>, %0, %cst [2] : vector<1x64x256xf32> to vector<1x64xf32>
    %cst_2 = arith.constant 3.906250e-03 : f32
    %2 = vector.broadcast %cst_2 : f32 to vector<1x64xf32>
    %3 = arith.mulf %1, %2 : vector<1x64xf32>
    %c0_3 = arith.constant 0 : index
    %c0_4 = arith.constant 0 : index
    %4 = vector.load %arg2[%c0_3, %c0_4] : memref<64x4xf32, #tpu.memory_space<vmem>>, vector<64x4xf32>
    %cst_5 = arith.constant dense<0.000000e+00> : vector<1x4xf32>
    %5 = tpu.matmul %3, %4, %cst_5 {dimension_numbers = #tpu.dot_dimension_numbers<[1], [0], [0], [1], [0, 0, 1, 1], [], []>} : vector<1x64xf32>, vector<64x4xf32>, vector<1x4xf32> -> vector<1x4xf32>
    %c0_6 = arith.constant 0 : index
    %c0_7 = arith.constant 0 : index
    %6 = vector.load %arg3[%c0_6, %c0_7] : memref<1x4xf32, #tpu.memory_space<vmem>>, vector<1x4xf32>
    %7 = arith.addf %5, %6 : vector<1x4xf32>
    %cst_8 = arith.constant 0.000000e+00 : f32
    %8 = vector.broadcast %cst_8 : f32 to vector<1x4xf32>
    %9 = arith.cmpf ogt, %7, %8 : vector<1x4xf32>
    %cst_9 = arith.constant 0.00999999977 : f32
    %10 = vector.broadcast %cst_9 : f32 to vector<1x4xf32>
    %11 = arith.mulf %10, %7 : vector<1x4xf32>
    %12 = arith.select %9, %7, %11 : vector<1x4xi1>, vector<1x4xf32>
    %c0_10 = arith.constant 0 : index
    %c0_11 = arith.constant 0 : index
    %13 = vector.load %arg4[%c0_10, %c0_11] : memref<4x64xf32, #tpu.memory_space<vmem>>, vector<4x64xf32>
    %cst_12 = arith.constant dense<0.000000e+00> : vector<1x64xf32>
    %14 = tpu.matmul %12, %13, %cst_12 {dimension_numbers = #tpu.dot_dimension_numbers<[1], [0], [0], [1], [0, 0, 1, 1], [], []>} : vector<1x4xf32>, vector<4x64xf32>, vector<1x64xf32> -> vector<1x64xf32>
    %c0_13 = arith.constant 0 : index
    %c0_14 = arith.constant 0 : index
    %15 = vector.load %arg5[%c0_13, %c0_14] : memref<1x64xf32, #tpu.memory_space<vmem>>, vector<1x64xf32>
    %16 = arith.addf %14, %15 : vector<1x64xf32>
    %cst_15 = arith.constant 0.000000e+00 : f32
    %17 = vector.broadcast %cst_15 : f32 to vector<1x64xf32>
    %18 = arith.subf %17, %16 : vector<1x64xf32>
    %19 = math.exp %18 : vector<1x64xf32>
    %cst_16 = arith.constant 1.000000e+00 : f32
    %20 = vector.broadcast %cst_16 : f32 to vector<1x64xf32>
    %21 = arith.addf %20, %19 : vector<1x64xf32>
    %22 = tpu.reciprocal %21 : vector<1x64xf32> -> vector<1x64xf32>
    %c0_17 = arith.constant 0 : index
    %c0_18 = arith.constant 0 : index
    %c0_19 = arith.constant 0 : index
    %23 = vector.load %arg1[%c0_17, %c0_18, %c0_19] : memref<1x64x256xf32, #tpu.memory_space<vmem>>, vector<1x64x256xf32>
    %24 = vector.shape_cast %22 : vector<1x64xf32> to vector<1x64x1xf32>
    %25 = vector.broadcast %24 : vector<1x64x1xf32> to vector<1x64x256xf32>
    %26 = arith.mulf %23, %25 : vector<1x64x256xf32>
    %c0_20 = arith.constant 0 : index
    %c0_21 = arith.constant 0 : index
    %c0_22 = arith.constant 0 : index
    %27 = vector.load %arg6[%c0_20, %c0_21, %c0_22] : memref<1x64x256xf32, #tpu.memory_space<vmem>>, vector<1x64x256xf32>
    tpu.vector_store %arg6[%c0_20, %c0_21, %c0_22], %26 {strides = array<i32>} : memref<1x64x256xf32, #tpu.memory_space<vmem>>, vector<1x64x256xf32>,
    return
  }
  func.func @transform_0(%arg0: i32) -> (i32, i32, i32) {
    %c0_i32 = arith.constant 0 : i32
    %c0_i32_0 = arith.constant 0 : i32
    %c0_i32_1 = arith.constant 0 : i32
    return %arg0, %c0_i32, %c0_i32_0 : i32, i32, i32
  }
  func.func @transform_1(%arg0: i32) -> (i32, i32) {
    %c0_i32 = arith.constant 0 : i32
    %c0_i32_0 = arith.constant 0 : i32
    %c0_i32_1 = arith.constant 0 : i32
    return %c0_i32, %c0_i32_0 : i32, i32
  }
  func.func @transform_2(%arg0: i32) -> (i32, i32) {
    %c0_i32 = arith.constant 0 : i32
    %c0_i32_0 = arith.constant 0 : i32
    %c0_i32_1 = arith.constant 0 : i32
    return %c0_i32, %c0_i32_0 : i32, i32
  }
  func.func @transform_3(%arg0: i32) -> (i32, i32) {
    %c0_i32 = arith.constant 0 : i32
    %c0_i32_0 = arith.constant 0 : i32
    %c0_i32_1 = arith.constant 0 : i32
    return %c0_i32, %c0_i32_0 : i32, i32
  }
  func.func @transform_4(%arg0: i32) -> (i32, i32) {
    %c0_i32 = arith.constant 0 : i32
    %c0_i32_0 = arith.constant 0 : i32
    %c0_i32_1 = arith.constant 0 : i32
    return %c0_i32, %c0_i32_0 : i32, i32
  }
  func.func @transform_5(%arg0: i32) -> (i32, i32, i32) {
    %c0_i32 = arith.constant 0 : i32
    %c0_i32_0 = arith.constant 0 : i32
    %c0_i32_1 = arith.constant 0 : i32
    return %arg0, %c0_i32, %c0_i32_0 : i32, i32, i32
  }
}

</mosaic_0001>

<bundles_post_ra>
// kernel: tpu_custom_call.1
= control target key start
LH: loop header
LB: loop body
LE: loop exit
PB: predicated region body
PF: predicated region fallthrough
CT: control target
= control target key end

     0   :  { %10 = vsyncpa [#allocation3], 0  ;;  %s1597_s0 = inlined_call_operand.hbm [shape: f32[4,64,256], index: 0, kind: input, shape index: {}]   ;;  %s1598_s1 = inlined_call_operand.hbm [shape: f32[64,4], index: 1, kind: input, shape index: {}]   ;;  %s1599_s2 = inlined_call_operand.hbm [shape: f32[1,4], index: 2, kind: input, shape index: {}]   ;;  %s1600_s3 = inlined_call_operand.hbm [shape: f32[4,64], index: 3, kind: input, shape index: {}]   ;;  %s1601_s4 = inlined_call_operand.hbm [shape: f32[1,64], index: 4, kind: input, shape index: {}]   ;;  %s1602_s5 = inlined_call_operand.hbm [shape: f32[4,64,256], index: 5, kind: output, shape index: {}]  }
   0x1   :  { %12 = vsyncpa [#allocation3 + $0x1], 0 }
   0x2   :  { %13 = vsyncpa [#allocation6], 0 }
   0x3   :  { %14 = vsyncpa [#allocation9], 0 }
   0x4   :  { %15 = vsyncpa [#allocation4], 0 }
   0x5   :  { %17 = vsyncpa [#allocation4 + $0x1], 0  ;;  %s1205_s18 = smov 0   ;;  %s1207_s19 = smov 0  }
   0x6   :  { %s1209_s20 = smov 0   ;;  %s1211_s21 = smov 0  }
   0x7 LB: > { %s1226_s22 = sadd.s32 4294967295, %s1158_s21   ;;  %s768_s23 = sadd.s32 4294967294, %s1158_s21   ;;  %s1158_s21 = sphi %s1211_s21, %s1624_s21   ;;  %s1154_s20 = sphi %s1209_s20, %s1623_s20   ;;  %s1150_s19 = sphi %s1207_s19, %s1622_s19   ;;  %s1146_s18 = sphi %s1205_s18, %s1621_s18  }
   0x8   : > { %p43_p0 = scmp.ne.s32.totalorder %s1150_s19, %s1146_s18  ;;  %p1603_p1 = scmp.eq.s32.totalorder %s1226_s22, 0 }
   0x9   : > { %p157_p3 = scmp.eq.s32.totalorder %s768_s23, 3  ;;  %p769_p5 = scmp.ge.s32.totalorder %s1158_s21, 1 }
   0xa   : > { %p1235_p4 = por %p1603_p1, %p43_p0  ;;  %p164_p7 = scmp.lt.s32.totalorder %s1158_s21, 5 }
   0xb   : > { %p1240_p6 = por %p157_p3, %p43_p0  ;;  %s1160_s27 = smov [#allocation5]  }
   0xc   : > { %s1606_s24 = scalar_select %p1235_p4, 1, 0 }
   0xd   : > { %s1607_s25 = scalar_select %p1240_p6, 1, 0 }
   0xe   : > { %p1245_p8 = pnand %p769_p5, %p164_p7  ;;  %s176_s28 = sshll.u32 %s1160_s27, 4  ;;  %s1249_s28 = int_to_ptr.vmem [resolvable:$true] %s176_s28 }
   0xf   : > { %s1161_s30 = smov [#allocation8]   ;;  %s1162_s7 = smov [#allocation7]  }
  0x10   : > { %s1608_s26 = scalar_select %p1245_p8, 1, 0 }
  0x11   : > { %p862_p9 = pneg %p1245_p8  ;;  %s201_s6 = sshll.u32 %s1161_s30, 4  ;;  %s1259_s6 = int_to_ptr.vmem [resolvable:$true] %s201_s6 }
  0x12   : > { %s1261_s8 = sshll.u32 %s1162_s7, 4  ;;  %s942_s11 = scalar_lea.hbm %s1598_s1, 1024  ;;  %s191_s8 = int_to_ptr.vmem [resolvable:$true] %s1261_s8 }
  0x13   : > { %p1255_p10 = pnand %p862_p9, %p1603_p1  ;;  %p943_p11 = scmp.ne.s32.totalorder %s1598_s1, %s942_s11 }
  0x14   : > { %p949_p3 = scmp.lt.u32.totalorder %s942_s11, %s1598_s1 }
  0x15   : > { %p1271_p12 = pneg %p1255_p10 }
  0x17   : > { %p945_p13 = pnand %p1271_p12, %p943_p11 }
  0x19   : > { %p946_p0 = pneg %p945_p13 }
  0x1b   : > { %p951_p5 = pnand %p949_p3, %p946_p0 }
  0x1d   : > { %954 = shalt.err (!%p951_p5)
}
  0x1e   : > { %s955_s17 = scalar_lea.vmem %s1249_s28, 1024  ;;  %p963_p2 = scmp.lt.s32.totalorder %s1249_s28, %s1249_s28 }
  0x1f   : > { %p956_p7 = scmp.ne.s32.totalorder %s1249_s28, %s955_s17  ;;  %p964_p6 = scmp.lt.s32.totalorder %s955_s17, %s955_s17 }
  0x21   : > { %p958_p9 = pnand %p956_p7, %p1271_p12  ;;  %p965_p11 = por %p964_p6, %p963_p2 }
  0x23   : > { %p959_p1 = pneg %p958_p9 }
  0x25   : > { %p966_p13 = pnand %p965_p11, %p959_p1 }
  0x27   : > { %969 = shalt.err (!%p966_p13)
}
  0x28   : > { %s1163_s23 = smov 128   ;;  %s1164_s27 = smov 8  }
  0x29   : > { %865 = dma.hbm_to_vmem [thread:$0]  (!%p1255_p10), %s1598_s1, 1024, %s1249_s28, [#allocation6], %s1163_s23, %s1163_s23, %s1164_s27  }
  0x2a   : > { %s970_s11 = scalar_lea.hbm %s1600_s3, 64 }
  0x2b   : > { %p971_p2 = scmp.ne.s32.totalorder %s1600_s3, %s970_s11  ;;  %p977_p0 = scmp.lt.u32.totalorder %s970_s11, %s1600_s3 }
  0x2d   : > { %p973_p1 = pnand %p971_p2, %p1271_p12 }
  0x2f   : > { %p974_p6 = pneg %p973_p1 }
  0x31   : > { %p979_p3 = pnand %p977_p0, %p974_p6 }
  0x33   : > { %982 = shalt.err (!%p979_p3)
}
  0x34   : > { %s983_s28 = scalar_lea.vmem %s1259_s6, 64  ;;  %p991_p11 = scmp.lt.s32.totalorder %s1259_s6, %s1259_s6 }
  0x35   : > { %p984_p5 = scmp.ne.s32.totalorder %s1259_s6, %s983_s28  ;;  %p992_p13 = scmp.lt.s32.totalorder %s983_s28, %s983_s28 }
  0x37   : > { %p986_p7 = pnand %p984_p5, %p1271_p12  ;;  %p993_p2 = por %p992_p13, %p991_p11 }
  0x39   : > { %p987_p9 = pneg %p986_p7 }
  0x3b   : > { %p994_p1 = pnand %p993_p2, %p987_p9 }
  0x3d   : > { %997 = shalt.err (!%p994_p1)
}
  0x3e   : > { %871 = dma.hbm_to_vmem [thread:$0]  (!%p1255_p10), %s1600_s3, 64, %s1259_s6, [#allocation9]  }
  0x3f   : > { %s998_s7 = scalar_lea.hbm %s1599_s2, 16 }
  0x40   : > { %p999_p6 = scmp.ne.s32.totalorder %s1599_s2, %s998_s7  ;;  %p1005_p5 = scmp.lt.u32.totalorder %s998_s7, %s1599_s2 }
  0x42   : > { %p1001_p0 = pnand %p999_p6, %p1271_p12 }
  0x44   : > { %p1002_p3 = pneg %p1001_p0 }
  0x46   : > { %p1007_p7 = pnand %p1005_p5, %p1002_p3 }
  0x48   : > { %1010 = shalt.err (!%p1007_p7)
}
  0x49   : > { %s1011_s13 = scalar_lea.vmem %s191_s8, 16  ;;  %s1018_s6 = scalar_lea.vmem %s191_s8, 32 }
  0x4a   : > { %p1012_p9 = scmp.ne.s32.totalorder %s191_s8, %s1011_s13  ;;  %p1019_p2 = scmp.lt.s32.totalorder %s191_s8, %s191_s8 }
  0x4b   : > { %p1020_p1 = scmp.lt.s32.totalorder %s1018_s6, %s1011_s13 }
  0x4c   : > { %p1014_p11 = pnand %p1012_p9, %p1271_p12 }
  0x4d   : > { %p1021_p4 = por %p1020_p1, %p1019_p2 }
  0x4e   : > { %p1015_p13 = pneg %p1014_p11 }
  0x50   : > { %p1022_p8 = pnand %p1021_p4, %p1015_p13 }
  0x52   : > { %1025 = shalt.err (!%p1022_p8)
}
  0x53   : > { %868 = dma.hbm_to_vmem [thread:$0]  (!%p1255_p10), %s1599_s2, 16, %s191_s8, [#allocation6]  }
  0x54   : > { %s1165_s28 = smov [#allocation10]   ;;  %s1026_s30 = scalar_lea.hbm %s1601_s4, 16 }
  0x55   : > { %s212_s17 = sshll.u32 %s1165_s28, 4  ;;  %p1027_p6 = scmp.ne.s32.totalorder %s1601_s4, %s1026_s30  ;;  %s213_s17 = int_to_ptr.vmem [resolvable:$true] %s212_s17 }
  0x56   : > { %p1033_p0 = scmp.lt.u32.totalorder %s1026_s30, %s1601_s4 }
  0x57   : > { %p1029_p4 = pnand %p1027_p6, %p1271_p12 }
  0x59   : > { %p1030_p8 = pneg %p1029_p4 }
  0x5b   : > { %p1035_p3 = pnand %p1033_p0, %p1030_p8 }
  0x5d   : > { %1038 = shalt.err (!%p1035_p3)
}
  0x5e   : > { %s1039_s8 = scalar_lea.vmem %s213_s17, 16  ;;  %s1046_s12 = scalar_lea.vmem %s213_s17, 32 }
  0x5f   : > { %p1040_p5 = scmp.ne.s32.totalorder %s213_s17, %s1039_s8  ;;  %p1047_p11 = scmp.lt.s32.totalorder %s213_s17, %s213_s17 }
  0x60   : > { %p1048_p13 = scmp.lt.s32.totalorder %s1046_s12, %s1039_s8 }
  0x61   : > { %p1042_p7 = pnand %p1040_p5, %p1271_p12 }
  0x62   : > { %p1049_p2 = por %p1048_p13, %p1047_p11 }
  0x63   : > { %p1043_p9 = pneg %p1042_p7 }
  0x65   : > { %p1050_p1 = pnand %p1049_p2, %p1043_p9 }
  0x67   : > { %1053 = shalt.err (!%p1050_p1)
}
  0x68   : > { %874 = dma.hbm_to_vmem [thread:$0]  (!%p1255_p10), %s1601_s4, 16, %s213_s17, [#allocation9]  }
  0x69   : > { %s1353_s14 = sadd.s32 1, %s1158_s21   ;;  %s30_s15 = sadd.s32 1, %s1154_s20 }
  0x6a   : > { %s27_s29 = ssub.s32 %s1158_s21, %s1353_s14  ;;  %p37_p12 = scmp.ne.s32.totalorder %s1154_s20, %s1150_s19 }
  0x6b   : > { %p28_p6 = scmp.eq.s32.totalorder %s27_s29, 0  ;;  %p38_p4 = scmp.eq.s32.totalorder %s1158_s21, 0 }
  0x6c   : > { %p1611_p8 = scmp.eq.s32.totalorder %s1226_s22, 3  ;;  %p887_p3 = scmp.lt.s32.totalorder %s1158_s21, 4 }
  0x6d   : > { %s1369_s28 = scalar_select %p28_p6, %s1154_s20, %s30_s15  }
  0x6e   : > { %p1363_p0 = por %p1611_p8, %p37_p12  ;;  %p39_p5 = por %p38_p4, %p37_p12 }
  0x6f   : > { %s223_s23 = sand.u32 1, %s1154_s20   ;;  %s793_s17 = sshll.u32 %s1158_s21, 11 }
  0x70   : > { %s775_s27 = sshll.u32 %s223_s23, 7  ;;  %s1376_s9 = scalar_lea.hbm %s1597_s0, %s793_s17 }
  0x71   : > { %s227_s10 = scalar_lea.vmem [#allocation2], %s775_s27  ;;  %p1380_p10 = pnand %p887_p3, %p39_p5 }
  0x72   : > { %s234_s11 = sshll.u32 %s227_s10, 4  ;;  %s1384_s12 = scalar_lea.sflag [#allocation3], %s223_s23  ;;  %s1378_s11 = int_to_ptr.vmem [resolvable:$true] %s234_s11 }
  0x73   : > { %s1054_s13 = scalar_lea.hbm %s1376_s9, 2048  ;;  %p1056_p9 = pneg %p1380_p10 }
  0x74   : > { %p1055_p7 = scmp.ne.s32.totalorder %s1376_s9, %s1054_s13  ;;  %s1059_s29 = scalar_lea.hbm %s1597_s0, 8192 }
  0x75   : > { %p1060_p2 = scmp.lt.u32.totalorder %s1376_s9, %s1597_s0  ;;  %p1061_p1 = scmp.lt.u32.totalorder %s1059_s29, %s1054_s13 }
  0x76   : > { %p1057_p11 = pnand %p1056_p9, %p1055_p7  ;;  %p1063_p6 = scmp.lt.u32.totalorder %s1054_s13, %s1376_s9 }
  0x77   : > { %p1062_p12 = por %p1061_p1, %p1060_p2 }
  0x78   : > { %p1058_p13 = pneg %p1057_p11 }
  0x79   : > { %p1064_p4 = por %p1063_p6, %p1062_p12 }
  0x7b   : > { %p1065_p8 = pnand %p1064_p4, %p1058_p13 }
  0x7d   : > { %1068 = shalt.err (!%p1065_p8)
}
  0x7e   : > { %s1069_s23 = scalar_lea.vmem %s1378_s11, 2048  ;;  %s1166_s30 = smov [#allocation2]  }
  0x7f   : > { %p1070_p3 = scmp.ne.s32.totalorder %s1378_s11, %s1069_s23  ;;  %s1074_s7 = sshll.u32 %s1166_s30, 4  ;;  %s1075_s7 = int_to_ptr.vmem [resolvable:$false] %s1074_s7 }
  0x80   : > { %s1076_s10 = scalar_lea.vmem %s1075_s7, 4096  ;;  %p1077_p11 = scmp.lt.s32.totalorder %s1378_s11, %s1075_s7 }
  0x81   : > { %p1072_p5 = pnand %p1070_p3, %p1056_p9  ;;  %p1078_p2 = scmp.lt.s32.totalorder %s1076_s10, %s1069_s23 }
  0x83   : > { %p1073_p7 = pneg %p1072_p5  ;;  %p1079_p1 = por %p1078_p2, %p1077_p11 }
  0x85   : > { %p1080_p12 = pnand %p1079_p1, %p1073_p7 }
  0x87   : > { %1083 = shalt.err (!%p1080_p12)
}
  0x88   : > { %s1167_s13 = smov 256   ;;  %s1168_s6 = smov 16  }
  0x89   : > { %878 = dma.hbm_to_vmem [thread:$0]  (!%p1380_p10), %s1376_s9, 2048, %s1378_s11, %s1384_s12, %s1167_s13, %s1167_s13, %s1168_s6  }
  0x8a   : > { %p1614_p9 = scmp.ne.s32.totalorder %s1608_s26, 0 }
  0x8b   : > { %s1415_s15 = sand.u32 (!%p1614_p9), 1, %s1150_s19   ;;  %p1615_p13 = scmp.ne.s32.totalorder (!%p1614_p9), %s1606_s24, 0 }
  0x8c   : > { %246 = sbr.rel (%p1614_p9) target bundleno = 927 (0x39f), region = 40  ;;  %s779_s29 = sshll.u32 (!%p1614_p9), %s1415_s15, 7 }
  0x8d   : > { %s249_s27 = scalar_lea.sflag (!%p1614_p9), [#allocation3], %s1415_s15  ;;  %s1421_s17 = scalar_lea.vmem (!%p1614_p9), [#allocation2], %s779_s29 }
  0x93   : > { %1129 = dma.done.wait (%p1615_p13), %s249_s27, 2048  }
  0x94   : > { %1131 = vsyncadd (%p1615_p13), %s249_s27, 4294965248  ;;  %p1616_p10 = scmp.eq.s32.totalorder %s1226_s22, 0 }
  0x96   : > { %1133 = dma.done.wait (%p1616_p10), [#allocation6], 1040   ;;  %p1617_p6 = pmov %p1616_p10 }
  0x98   : > { %1135 = vsyncadd (%p1617_p6), [#allocation6], 4294966256  ;;  %p1618_p4 = pmov %p1617_p6 }
  0x9a   : > { %1137 = dma.done.wait (%p1618_p4), [#allocation9], 80   ;;  %p1619_p8 = pmov %p1618_p4 }
  0x9b   : > { %v1436_v0 = vld [vmem:[%s1421_s17] sm:$0xff]  ;;  %v1439_v1 = vld [vmem:[%s1421_s17 + $0x8] sm:$0xff]  ;;  %v1450_v5 = vld [vmem:[%s1421_s17 + $0x10] sm:$0xff]  ;;  %v1169_v27 = vmov 0.0|0.0   ;;  %vm1170_vm0 = vmmov 0   ;;  %v1171_v37 = vmov 0.0   ;;  %v360_v38 = vlaneseq }
  0x9c   : > { %1139 = vsyncadd (%p1619_p8), [#allocation9], 4294967216  ;;  %v1442_v2 = vld [vmem:[%s1421_s17 + $0x20] sm:$0xff]  ;;  %v311_v3 = vadd.f32 %v1439_v1, %v1436_v0  ;;  %v1447_v4 = vld [vmem:[%s1421_s17 + $0x28] sm:$0xff]  ;;  %830 = vmatprep.subr.bf16.mxu0 %v1169_v27  ;;  %822 = vmatprep.mubr.msk.f32.mxu0 %vm1170_vm0, %v1171_v37  ;;  %vm371_vm1 = vcmask 130112   ;;  %vm378_vm2 = vcmask 195712  }
  0x9d   : > { %v1453_v6 = vld [vmem:[%s1421_s17 + $0x18] sm:$0xff]  ;;  %v317_v7 = vadd.f32 %v1447_v4, %v1442_v2  ;;  %v1458_v8 = vld [vmem:[%s1421_s17 + $0x30] sm:$0xff]  ;;  %v1468_v12 = vld [vmem:[%s1421_s17 + $0x40] sm:$0xff]  ;;  %825 = vmatprep.subr.mxu1 %v1171_v37  ;;  %827 = vmatprep.mubr.msk.f32.mxu1 %vm1170_vm0, %v1171_v37  ;;  %v361_v39 = vand.u32 127, %v360_v38  ;;  %v1499_v40 = vshrl.u32 %v360_v38, 7  ;;  %vm385_vm3 = vcmask 261312  }
  0x9e   : > { %v1461_v9 = vld [vmem:[%s1421_s17 + $0x38] sm:$0xff]  ;;  %312 = vadd.xlane.f32.xlu0 %v311_v3  ;;  %v314_v10 = vadd.f32 %v1453_v6, %v1450_v5  ;;  %v1471_v13 = vld [vmem:[%s1421_s17 + $0x48] sm:$0xff]  ;;  %v1474_v14 = vld [vmem:[%s1421_s17 + $0x50] sm:$0xff]  ;;  %vm392_vm4 = vcmask 326912   ;;  %vm399_vm5 = vcmask 392512   ;;  %vm406_vm6 = vcmask 458112  }
  0x9f   : > { %318 = vadd.xlane.f32.xlu1 %v317_v7  ;;  %v320_v11 = vadd.f32 %v1461_v9, %v1458_v8  ;;  %v1477_v15 = vld [vmem:[%s1421_s17 + $0x58] sm:$0xff]  ;;  %v323_v16 = vadd.f32 %v1471_v13, %v1468_v12  ;;  %v1484_v18 = vld [vmem:[%s1421_s17 + $0x60] sm:$0xff]  ;;  %v1487_v19 = vld [vmem:[%s1421_s17 + $0x68] sm:$0xff]  ;;  %v366_v41 = vadd.s32 4294967288, %v361_v39  ;;  %v373_v43 = vadd.s32 4294967280, %v361_v39  ;;  %s1517_s24 = scalar_lea.vmem [#allocation11], %s779_s29 }
  0xa0   : > { %v326_v17 = vadd.f32 %v1477_v15, %v1474_v14  ;;  %v1490_v20 = vld [vmem:[%s1421_s17 + $0x70] sm:$0xff]  ;;  %v1493_v21 = vld [vmem:[%s1421_s17 + $0x78] sm:$0xff]  ;;  %v329_v22 = vadd.f32 %v1487_v19, %v1484_v18  ;;  %v343_v24 = vld [vmem:[#allocation5] sm:$0xff]  ;;  %v380_v44 = vadd.s32 4294967272, %v361_v39  ;;  %v364_v46 = vsub.s32 %v361_v39, %v1499_v40  ;;  %s794_s26 = sshll.u32 %s1226_s22, 11  ;;  %s657_s9 = sshll.u32 %s1517_s24, 4  ;;  %s1550_s9 = int_to_ptr.vmem [resolvable:$true] %s657_s9 }
  0xa1   : > { %v332_v23 = vadd.f32 %v1493_v21, %v1490_v20  ;;  %v344_v25 = vld [vmem:[#allocation5 + $0x8] sm:$0xff]  ;;  %v345_v28 = vld [vmem:[#allocation5 + $0x10] sm:$0xff]  ;;  %v346_v29 = vld [vmem:[#allocation5 + $0x18] sm:$0xff]  ;;  %v369_v48 = vsub.s32 %v366_v41, %v1499_v40  ;;  %v387_v49 = vadd.s32 4294967264, %v361_v39  ;;  %v376_v50 = vsub.s32 %v373_v43, %v1499_v40  ;;  %s1548_s12 = scalar_lea.hbm %s1602_s5, %s794_s26  ;;  %s644_s22 = scalar_lea.sflag [#allocation4], %s1415_s15 }
  0xa2   : > { %315 = vadd.xlane.f32.xlu0 %v314_v10  ;;  %v831_v26 = vpack.c.bf16 %v344_v25, %v343_v24  ;;  %v834_v30 = vpack.c.bf16 %v346_v29, %v345_v28  ;;  %v347_v31 = vld [vmem:[#allocation5 + $0x20] sm:$0xff]  ;;  %v348_v32 = vld [vmem:[#allocation5 + $0x28] sm:$0xff]  ;;  %v349_v34 = vld [vmem:[#allocation5 + $0x30] sm:$0xff]  ;;  %v383_v53 = vsub.s32 %v380_v44, %v1499_v40  ;;  %v394_v54 = vadd.s32 4294967256, %v361_v39  ;;  %s1084_s23 = scalar_lea.vmem %s1550_s9, 2048  ;;  %s1172_s30 = smov [#allocation11]  }
  0xa3   : > { %321 = vadd.xlane.f32.xlu1 %v320_v11  ;;  %v837_v33 = vpack.c.bf16 %v348_v32, %v347_v31  ;;  %v350_v35 = vld [vmem:[#allocation5 + $0x38] sm:$0xff]  ;;  %v390_v60 = vsub.s32 %v387_v49, %v1499_v40  ;;  %v401_v61 = vadd.s32 4294967248, %v361_v39  ;;  %v408_v10 = vadd.s32 4294967240, %v361_v39  ;;  %v491_v39 = vld [vmem:[#allocation8] sm:$0xf]  ;;  %p1085_p3 = scmp.ne.s32.totalorder %s1550_s9, %s1084_s23  ;;  %s1088_s7 = sshll.u32 %s1172_s30, 4  ;;  %s1089_s7 = int_to_ptr.vmem [resolvable:$false] %s1088_s7 }
  0xa4   : > { %832 = vmatpush3.bf16.msra.mxu0 %v831_v26  ;;  %v840_v36 = vpack.c.bf16 %v350_v35, %v349_v34  ;;  %v397_v7 = vsub.s32 %v394_v54, %v1499_v40  ;;  %vm413_vm7 = vcmask 523712   ;;  %vm415_vm8 = vcmask 523264   ;;  %v351_v41 = vld [vmem:[#allocation7] sm:$0x1]  ;;  %s1090_s10 = scalar_lea.vmem %s1089_s7, 4096  ;;  %p1091_p11 = scmp.lt.s32.totalorder %s1550_s9, %s1089_s7 }
  0xa5   : > { %833 = vmatprep.subr.bf16.mxu0 %v1169_v27  ;;  %v404_v26 = vsub.s32 %v401_v61, %v1499_v40  ;;  %v411_v29 = vsub.s32 %v408_v10, %v1499_v40  ;;  %vm497_vm9 = vcmask 1043456   ;;  %vm493_vm11 = vcmask 31744   ;;  %p1086_p5 = pnand %p1085_p3, %p1363_p0  ;;  %p1092_p2 = scmp.lt.s32.totalorder %s1090_s10, %s1084_s23 }
  0xa6   : > { %324 = vadd.xlane.f32.xlu0 %v323_v16  ;;  %826 = vmatpush3.msk.msra.mxu1 %vm497_vm9, %v491_v39 }
  0xa7   : > { %327 = vadd.xlane.f32.xlu1 %v326_v17  ;;  %p1087_p7 = pneg %p1086_p5  ;;  %p1093_p1 = por %p1092_p2, %p1091_p11 }
  0xa8   : > { %835 = vmatpush3.bf16.msra.mxu0 %v834_v30 }
  0xa9   : > { %836 = vmatprep.subr.bf16.mxu0 %v1169_v27  ;;  %p1094_p12 = pnand %p1093_p1, %p1087_p7 }
  0xaa   : > { %330 = vadd.xlane.f32.xlu0 %v329_v22 }
  0xab   : > { %333 = vadd.xlane.f32.xlu1 %v332_v23 }
  0xac   : > { %838 = vmatpush3.bf16.msra.mxu0 %v837_v33 }
  0xad   : > { %839 = vmatprep.subr.bf16.mxu0 %v1169_v27 }
  0xb0   : > { %841 = vmatpush3.bf16.msra.mxu0 %v840_v36 }
 0x12b   : > { %v313_v42 = vpop.xlane.xlu0 %312 }
 0x12c   : > { %v319_v45 = vpop.xlane.xlu1 %318  ;;  %v335_v47 = vmul.f32 0.00390625, %v313_v42 }
 0x12d   : > { %v337_v51 = vmul.f32 0.00390625, %v319_v45 }
 0x12e   : > { %v365_v58 = vrot.slane %v335_v47, %v364_v46  ;;  %v492_v47 = vld [vmem:[#allocation10] sm:$0x1] }
 0x12f   : > { %v316_v52 = vpop.xlane.xlu0 %315  ;;  %v377_v62 = vrot.slane %v337_v51, %v376_v50 }
 0x130   : > { %v336_v55 = vmul.f32 0.00390625, %v316_v52  ;;  %v322_v56 = vpop.xlane.xlu1 %321 }
 0x131   : > { %v338_v57 = vmul.f32 0.00390625, %v322_v56 }
 0x132   : > { %v370_v59 = vrot.slane %v336_v55, %v369_v48  ;;  %v578_v55 = vsub.s32 0, %v1499_v40 }
 0x133   : > { %v384_v63 = vrot.slane %v338_v57, %v383_v53  ;;  %v325_v3 = vpop.xlane.xlu0 %324 }
 0x134   : > { %v372_v11 = vsel %vm371_vm1, %v370_v59, %v365_v58  ;;  %v339_v16 = vmul.f32 0.00390625, %v325_v3  ;;  %v328_v17 = vpop.xlane.xlu1 %327 }
 0x135   : > { %v379_v22 = vsel %vm378_vm2, %v377_v62, %v372_v11  ;;  %v340_v23 = vmul.f32 0.00390625, %v328_v17 }
 0x136   : > { %v386_v24 = vsel %vm385_vm3, %v384_v63, %v379_v22  ;;  %v391_v25 = vrot.slane %v339_v16, %v390_v60 }
 0x137   : > { %v398_v27 = vrot.slane %v340_v23, %v397_v7  ;;  %v331_v28 = vpop.xlane.xlu0 %330 }
 0x138   : > { %v393_v30 = vsel %vm392_vm4, %v391_v25, %v386_v24  ;;  %v341_v31 = vmul.f32 0.00390625, %v331_v28  ;;  %v334_v32 = vpop.xlane.xlu1 %333 }
 0x139   : > { %v342_v33 = vmul.f32 0.00390625, %v334_v32  ;;  %v400_v35 = vsel %vm399_vm5, %v398_v27, %v393_v30 }
 0x13a   : > { %v405_v34 = vrot.slane %v341_v31, %v404_v26 }
 0x13b   : > { %v412_v36 = vrot.slane %v342_v33, %v411_v29 }
 0x13c   : > { %v407_v37 = vsel %vm406_vm6, %v405_v34, %v400_v35 }
 0x13d   : > { %v414_v38 = vsel %vm413_vm7, %v412_v36, %v407_v37 }
 0x13e   : > { %823 = vmatmul.mubr.msk.f32.vlgmr.msra.gmra.mrb[0].mxu0 %vm415_vm8, %v414_v38 }
 0x211   : > { %v484_v42 = vpop.f32.mrb[0].mxu0 }
 0x212   : > { %v485_v43 = vadd.f32 %v484_v42, %v351_v41  ;;  %v824_v44 = vpop.f32.mrb[1].mxu0 }
 0x214   : > { %vm488_vm10 = vcmp.gt.f32.partialorder %v485_v43, 0.0  ;;  %v489_v45 = vmul.f32 0.01, %v485_v43 }
 0x216   : > { %v490_v46 = vsel %vm488_vm10, %v485_v43, %v489_v45 }
 0x217   : > { %828 = vmatmul.mubr.msk.f32.vlgmr.msra.gmra.mrb[0].mxu1 %vm493_vm11, %v490_v46 }
 0x2ea   : > { %v567_v48 = vpop.f32.mrb[0].mxu1 }
 0x2eb   : > { %v568_v49 = vadd.f32 %v567_v48, %v492_v47  ;;  %v829_v50 = vpop.f32.mrb[1].mxu1 }
 0x2ed   : > { %v571_v51 = vsub.f32 0.0, %v568_v49 }
 0x2ef   : > { %v572_v52 = vmul.f32 1.442695, %v571_v51 }
 0x2f1   : > { %938 = vpow2.f32 %v572_v52 }
 0x2fb   : > { %v939_v53 = vpop.eup %938 }
 0x2fc   : > { %v574_v54 = vadd.f32 1.0, %v939_v53 }
 0x2fe   : > { %940 = vrcp.f32 %v574_v54 }
 0x308   : > { %v941_v56 = vpop.eup %940 }
 0x309   : > { %v579_v57 = vrot.slane %v941_v56, %v578_v55 }
 0x30b   : > { %585 = vbcast.lane.b32.xlu1 %v579_v57, 264  ;;  %581 = vbcast.lane.b32.xlu0 %v579_v57, 256 }
 0x30f   : > { %589 = vbcast.lane.b32.xlu1 %v579_v57, 272  ;;  %597 = vbcast.lane.b32.xlu0 %v579_v57, 288 }
 0x313   : > { %593 = vbcast.lane.b32.xlu1 %v579_v57, 280  ;;  %605 = vbcast.lane.b32.xlu0 %v579_v57, 304 }
 0x317   : > { %601 = vbcast.lane.b32.xlu1 %v579_v57, 296 }
 0x31b   : > { %609 = vbcast.lane.b32.xlu1 %v579_v57, 312 }
 0x37d   : > { %v586_v58 = vpop.permute.xlu1 %585  ;;  %v582_v59 = vpop.permute.xlu0 %581 }
 0x37e   : > { %v613_v60 = vmul.f32 %v586_v58, %v1450_v5  ;;  %v614_v61 = vmul.f32 %v586_v58, %v1453_v6  ;;  %v611_v62 = vmul.f32 %v582_v59, %v1436_v0  ;;  %v612_v40 = vmul.f32 %v582_v59, %v1439_v1 }
 0x380   : > { %629 = vst [vmem:[%s1517_s24 + $0x10] sm:$0xff] %v613_v60  ;;  %630 = vst [vmem:[%s1517_s24 + $0x18] sm:$0xff] %v614_v61 }
 0x381   : > { %627 = vst [vmem:[%s1517_s24] sm:$0xff] %v611_v62  ;;  %628 = vst [vmem:[%s1517_s24 + $0x8] sm:$0xff] %v612_v40  ;;  %v590_v5 = vpop.permute.xlu1 %589  ;;  %v598_v0 = vpop.permute.xlu0 %597 }
 0x382   : > { %v615_v1 = vmul.f32 %v590_v5, %v1442_v2  ;;  %v616_v6 = vmul.f32 %v590_v5, %v1447_v4  ;;  %v619_v63 = vmul.f32 %v598_v0, %v1468_v12  ;;  %v620_v3 = vmul.f32 %v598_v0, %v1471_v13 }
 0x384   : > { %631 = vst [vmem:[%s1517_s24 + $0x20] sm:$0xff] %v615_v1  ;;  %632 = vst [vmem:[%s1517_s24 + $0x28] sm:$0xff] %v616_v6 }
 0x385   : > { %635 = vst [vmem:[%s1517_s24 + $0x40] sm:$0xff] %v619_v63  ;;  %636 = vst [vmem:[%s1517_s24 + $0x48] sm:$0xff] %v620_v3  ;;  %v594_v7 = vpop.permute.xlu1 %593  ;;  %v606_v10 = vpop.permute.xlu0 %605 }
 0x386   : > { %v617_v2 = vmul.f32 %v594_v7, %v1458_v8  ;;  %v618_v11 = vmul.f32 %v594_v7, %v1461_v9  ;;  %v623_v4 = vmul.f32 %v606_v10, %v1484_v18  ;;  %v624_v12 = vmul.f32 %v606_v10, %v1487_v19 }
 0x388   : > { %633 = vst [vmem:[%s1517_s24 + $0x30] sm:$0xff] %v617_v2  ;;  %634 = vst [vmem:[%s1517_s24 + $0x38] sm:$0xff] %v618_v11 }
 0x389   : > { %639 = vst [vmem:[%s1517_s24 + $0x60] sm:$0xff] %v623_v4  ;;  %640 = vst [vmem:[%s1517_s24 + $0x68] sm:$0xff] %v624_v12  ;;  %v602_v13 = vpop.permute.xlu1 %601 }
 0x38a   : > { %v621_v16 = vmul.f32 %v602_v13, %v1474_v14  ;;  %v622_v17 = vmul.f32 %v602_v13, %v1477_v15 }
 0x38c   : > { %637 = vst [vmem:[%s1517_s24 + $0x50] sm:$0xff] %v621_v16  ;;  %638 = vst [vmem:[%s1517_s24 + $0x58] sm:$0xff] %v622_v17 }
 0x38d   : > { %v610_v8 = vpop.permute.xlu1 %609 }
 0x38e   : > { %v625_v9 = vmul.f32 %v610_v8, %v1490_v20  ;;  %v626_v14 = vmul.f32 %v610_v8, %v1493_v21 }
 0x390   : > { %641 = vst [vmem:[%s1517_s24 + $0x70] sm:$0xff] %v625_v9  ;;  %642 = vst [vmem:[%s1517_s24 + $0x78] sm:$0xff] %v626_v14 }
 0x391   : > { %1097 = shalt.err (!%p1094_p12)
}
 0x392   : > { %s1098_s13 = scalar_lea.hbm %s1548_s12, 2048  ;;  %s1102_s27 = scalar_lea.hbm %s1602_s5, 8192 }
 0x393   : > { %p1099_p9 = scmp.ne.s32.totalorder %s1548_s12, %s1098_s13  ;;  %p1103_p6 = scmp.lt.u32.totalorder %s1548_s12, %s1602_s5 }
 0x394   : > { %p1104_p4 = scmp.lt.u32.totalorder %s1102_s27, %s1098_s13  ;;  %p1106_p3 = scmp.lt.u32.totalorder %s1098_s13, %s1548_s12 }
 0x395   : > { %p1100_p13 = pnand %p1099_p9, %p1363_p0 }
 0x396   : > { %p1105_p8 = por %p1104_p4, %p1103_p6 }
 0x397   : > { %p1101_p10 = pneg %p1100_p13 }
 0x398   : > { %p1107_p5 = por %p1106_p3, %p1105_p8 }
 0x39a   : > { %p1108_p7 = pnand %p1107_p5, %p1101_p10 }
 0x39c   : > { %1111 = shalt.err (!%p1108_p7)
}
 0x39d   : > { %s1173_s26 = smov 256   ;;  %s1174_s11 = smov 16  }
 0x39e   : > { %860 = dma.vmem_to_hbm [thread:$0]  (%p1363_p0), %s1550_s9, 2048, %s1548_s12, %s644_s22, %s1173_s26, %s1173_s26, %s1174_s11  }
 0x39f PF: > { %p892_p11 = scmp.ge.s32.totalorder %s1158_s21, 2  ;;  %s672_s8 = sand.u32 1, %s1146_s18  }
 0x3a0   : > { %p1620_p2 = scmp.ne.s32.totalorder %s1607_s25, 0  ;;  %s673_s23 = scalar_lea.sflag [#allocation4], %s672_s8 }
 0x3a2   : > { %p880_p1 = pnand %p892_p11, %p1620_p2 }
 0x3a4   : > { %1141 = dma.done.wait (!%p880_p1), %s673_s23, 2048  }
 0x3a5   : > { %1143 = vsyncadd (!%p880_p1), %s673_s23, 4294965248  ;;  %p20_p12 = scmp.ge.s32.totalorder %s1353_s14, 6   ;;  %s1621_s18 = smov %s1150_s19 }
 0x3a6   : > { %s1622_s19 = smov %s1154_s20  ;;  %s1623_s20 = smov %s1369_s28 }
 0x3a7   : > { %s1624_s21 = smov %s1353_s14  ;;  %22 = sbr.rel (!%p20_p12) target bundleno = 7 (0x7), region = 101 }
 0x3ae   :  { %678 = vsyncpa [#allocation3], 1 }
 0x3af   :  { %680 = vsyncpa [#allocation3 + $0x1], 1 }
 0x3b0   :  { %681 = vsyncpa [#allocation6], 1 }
 0x3b1   :  { %682 = vsyncpa [#allocation9], 1 }
 0x3b2   :  { %683 = vsyncpa [#allocation4], 1 }
 0x3b3   :  { %685 = vsyncpa [#allocation4 + $0x1], 1 }

</bundles_post_ra>
